<compile_context>
chip_gen: v5e
topology: v5e:2x2
jax: 0.10.0
libtpu: 0.0.40
codegen_flags: <defaults>
</compile_context>

<pallas_src>
import functools

import numpy as np
import jax
import jax.numpy as jnp
from jax import lax
from jax.experimental import pallas as pl
from jax.experimental.pallas import tpu as pltpu


def _round_up(v, m):
    return ((v + m - 1) // m) * m


# ---------------------------------------------------------------------------
# Kernel
# ---------------------------------------------------------------------------
def _textcnn_fused_kernel(x_ref, w_ref, b_ref, m_ref, o_ref, *, wmax, l_rows):
    """One batch tile of the whole TextCNN forward.

    x_ref : (tb, S, D)          bf16  un-padded input tile
    w_ref : (wmax*D, out_cols)  bf16  banded conv-bank weights (tap-major, right-aligned)
    b_ref : (1, out_cols)       f32   biases (zero in the lane-padding columns)
    m_ref : (l_rows, out_cols)  f32   additive validity mask (0 valid / -1e30 invalid)
    o_ref : (tb, out_cols)      f32   pooled + bias + ReLU output (lane dense)
    """
    tb, s_len, d = x_ref.shape
    out_cols = o_ref.shape[-1]
    k = wmax * d
    l_src = l_rows + wmax - 1                      # padded sequence length held in VMEM

    xv = x_ref[...]                                # (tb, S, D) bf16
    # Zero-pad the sequence IN VMEM (the HBM copy carries only real rows).
    parts = []
    if wmax - 1 > 0:
        parts.append(jnp.zeros((tb, wmax - 1, d), xv.dtype))
    parts.append(xv)
    back = l_src - (wmax - 1) - s_len
    if back > 0:
        parts.append(jnp.zeros((tb, back, d), xv.dtype))
    x_pad = jnp.concatenate(parts, axis=1) if len(parts) > 1 else parts[0]

    # In-VMEM im2col: full-lane, sublane-shifted slices (XLU-slot copies, no HBM cost).
    x_win = jnp.concatenate(
        [x_pad[:, t:t + l_rows, :] for t in range(wmax)], axis=-1)   # (tb, l_rows, wmax*D)

    # Single tall-M 2-D MXU matmul for the entire conv bank (bf16 in, f32 accumulate).
    # l_rows is a multiple of 16 so the collapse/split reshapes stay sublane-aligned.
    y = jnp.dot(x_win.reshape(tb * l_rows, k), w_ref[...],
                preferred_element_type=jnp.float32)                  # (tb*l_rows, out_cols)
    y = y.reshape(tb, l_rows, out_cols) + m_ref[...][None]           # mask invalid windows

    pooled = jnp.max(y, axis=1)                                      # (tb, out_cols)
    # bias + ReLU after the max-pool (identical result, less VPU/broadcast work);
    # single full-width lane-dense store.
    o_ref[...] = jnp.maximum(pooled + b_ref[...], 0.0).astype(o_ref.dtype)


# ---------------------------------------------------------------------------
# Tile sizing / per-generation VMEM budgets
# ---------------------------------------------------------------------------
def _vmem_budgets():
    """Returns (vmem_limit_bytes, tile_budget_bytes, two_core_hint).

    v5e/v6e (and v4/v5p) have 128 MiB physical VMEM -> raise the scoped limit to
    ~96 MiB.  v7x has only 64 MiB (and two TensorCores) -> cap at <=48 MiB and hint
    that the grid should be even for dual-TC sharding."""
    try:
        cap = int(getattr(pltpu.get_tpu_info(), "vmem_capacity_bytes"))
    except Exception:
        cap = 64 << 20                       # unknown chip: assume the smallest (v7x-like)
    if cap >= (128 << 20):                   # v5e / v6e / v5p / v4
        return 96 << 20, 84 << 20, False
    limit = min(48 << 20, (cap * 3) // 4)    # v7x: stay well inside 64 MiB
    return limit, max(16 << 20, limit - (4 << 20)), True


def _pick_batch_tile(S, D, wmax, l_rows, out_cols, budget_bytes):
    """Largest batch tile whose *padded* VMEM footprint fits the budget.

    Counts the (8,128)/(16,128) tile padding of every buffer (D=32 lane-pads to 128,
    wmax*D=160 to 256, ...), the double-buffered input AND output blocks, and the
    in-kernel f32 matmul result / im2col temporaries."""
    d_p = _round_up(D, 128)                      # lane padding of the raw x tile
    k_p = _round_up(wmax * D, 128)               # lane padding of the im2col matrix
    s_p = _round_up(S, 16)                       # bf16 sublane packing of the x block
    l_src_p = _round_up(l_rows + wmax - 1, 16)
    per_row = (
        2 * s_p * d_p * 2                        # double-buffered bf16 x input block
        + 2 * out_cols * 4                       # double-buffered f32 output block
        + l_src_p * d_p * 2                      # in-kernel zero-padded x (bf16)
        + 2 * l_rows * k_p * 2                   # im2col matrix + flattened matmul operand
        + 2 * l_rows * out_cols * 4              # f32 matmul result + masked copy
    )
    fixed = (
        2 * _round_up(wmax * D, 16) * out_cols * 2   # banded weights (double-buffered)
        + 8 * out_cols * 4                           # bias
        + _round_up(l_rows, 8) * out_cols * 4        # validity mask
    )
    tb = int((budget_bytes - fixed) // max(per_row, 1))
    return max(8, (tb // 8) * 8)


def _largest_tile_with_even_grid(B, tb_max):
    """Largest multiple-of-8 tile <= tb_max whose grid has an even number (>=2) of
    steps, so ("parallel",) can split the batch across v7x's two TensorCores."""
    t = max(8, (min(tb_max, B) // 8) * 8)
    while t >= 8:
        steps = -(-B // t)
        if steps >= 2 and steps % 2 == 0:
            return t
        t -= 8
    return max(8, (min(tb_max, B) // 8) * 8)     # B too small to split evenly


# ---------------------------------------------------------------------------
# Wrapper
# ---------------------------------------------------------------------------
def textcnn_forward(x, weights, biases, filter_sizes, *, batch_tile=None):
    """x: (B, S, D) f32 -> (B, Co * len(filter_sizes)) f32 (matches TextCNN.forward)."""
    B, S, D = x.shape
    Co = weights[0].shape[-1]
    wmax = max(filter_sizes)
    n_out = Co * len(filter_sizes)
    out_cols = max(128, _round_up(n_out, 128))    # lane-dense output width
    # im2col / matmul rows, rounded so the in-kernel rank-3 <-> 2-D reshapes stay
    # aligned to the bf16 (16,128) sublane tile.
    l_rows = _round_up(S + wmax - 1, 16)

    x_bf = x.astype(jnp.bfloat16)                 # MXU operand; NO zero padding over HBM

    # Banded conv-bank weight (wmax*D, out_cols): a branch with window w occupies tap
    # slots [wmax-w, wmax) (right aligned) of its Co columns, zeros elsewhere.  With
    # right-aligned banding every "extra" window position of a smaller branch lies
    # entirely inside the zero padding (pre-bias value exactly 0) and is removed by the
    # additive mask below.
    w_banded = jnp.zeros((wmax * D, out_cols), jnp.float32)
    col = 0
    for w, weight in zip(filter_sizes, weights):
        tap = jnp.zeros((wmax, D, Co), jnp.float32).at[wmax - w:].set(
            weight.astype(jnp.float32))
        w_banded = w_banded.at[:, col:col + Co].set(tap.reshape(wmax * D, Co))
        col += Co
    w_banded = w_banded.astype(jnp.bfloat16)

    b_stack = jnp.zeros((1, out_cols), jnp.float32).at[:, :n_out].set(
        jnp.concatenate([b.reshape(1, Co) for b in biases], axis=-1).astype(jnp.float32))

    # Additive validity mask: window position l is valid for a branch with window w iff
    # l < S + w - 1 (its own pad=(w-1, w-1) output length, exactly the PyTorch range).
    # Lane-padding columns carry zero weights (y == 0 there) and stay unmasked.
    limits = np.full((out_cols,), l_rows, np.int32)
    col = 0
    for w in filter_sizes:
        limits[col:col + Co] = S + w - 1
        col += Co
    mask = np.where(np.arange(l_rows)[:, None] < limits[None, :], 0.0, -1e30)
    mask = jnp.asarray(mask, jnp.float32)

    vmem_limit, tile_budget, two_core = _vmem_budgets()
    if batch_tile is None:
        tb = min(_pick_batch_tile(S, D, wmax, l_rows, out_cols, tile_budget), B)
        if two_core and B > 8:
            tb = _largest_tile_with_even_grid(B, tb)
    else:
        tb = min(batch_tile, B)
    tb = B if tb >= B else max(8, (tb // 8) * 8)
    # NOTE: when B % tb != 0 the last x block reads past the end of the array; rows are
    # fully independent and Pallas masks the out-of-range output rows, so the returned
    # slice is still correct (pad B in the caller if cross-row ops are ever added).

    kernel = functools.partial(_textcnn_fused_kernel, wmax=wmax, l_rows=l_rows)
    out = pl.pallas_call(
        kernel,
        out_shape=jax.ShapeDtypeStruct((B, out_cols), jnp.float32),
        grid=(pl.cdiv(B, tb),),
        in_specs=[
            pl.BlockSpec((tb, S, D), lambda i: (i, 0, 0)),           # batch-tiled x
            pl.BlockSpec((wmax * D, out_cols), lambda i: (0, 0)),    # VMEM-resident weights
            pl.BlockSpec((1, out_cols), lambda i: (0, 0)),           # VMEM-resident bias
            pl.BlockSpec((l_rows, out_cols), lambda i: (0, 0)),      # VMEM-resident mask
        ],
        out_specs=pl.BlockSpec((tb, out_cols), lambda i: (i, 0)),
        compiler_params=pltpu.CompilerParams(
            dimension_semantics=("parallel",),    # megacore / dual-TC sharding on v7x
            vmem_limit_bytes=vmem_limit),
    )(x_bf, w_banded, b_stack, mask)
    return out[:, :n_out]


# ---------------------------------------------------------------------------
# Pure-JAX reference (mirrors the PyTorch forward)
# ---------------------------------------------------------------------------
def textcnn_reference(x, weights, biases, filter_sizes):
    x4 = x[:, None, :, :]                                   # (B, 1, S, D)
    outs = []
    for w, weight, bias in zip(filter_sizes, weights, biases):
        k = jnp.transpose(weight, (2, 0, 1))[:, None, :, :]    # (Co, 1, win, D)  OIHW
        y = lax.conv_general_dilated(
            x4, k, window_strides=(1, 1),
            padding=((w - 1, w - 1), (0, 0)),
            dimension_numbers=("NCHW", "OIHW", "NCHW"),
            precision=lax.Precision.HIGHEST)                # (B, Co, S+w-1, 1)
        y = jax.nn.relu(y + bias[0][None, :, None, None])
        outs.append(jnp.max(y[..., 0], axis=-1))            # max_pool1d over full length
    return jnp.concatenate(outs, axis=-1)


if __name__ == "__main__":
    # Small shapes consistent with the module's (batch, sequence, vector_dim) input.
    B, S, D, Co = 16, 8, 32, 16
    filter_sizes = [3, 4, 5]

    key = jax.random.PRNGKey(0)
    keys = jax.random.split(key, 1 + 2 * len(filter_sizes))
    x = jax.random.normal(keys[0], (B, S, D), jnp.float32)

    weights, biases = [], []
    for i, w in enumerate(filter_sizes):
        bound = float(1.0 / np.sqrt(1 * w * D))
        weights.append(jax.random.uniform(
            keys[1 + 2 * i], (w, D, Co), jnp.float32, -bound, bound))
        biases.append(jax.random.uniform(
            keys[2 + 2 * i], (1, Co), jnp.float32, -bound, bound))

    # Explicit 2-step grid (exercises the multi-tile path).
    out = jax.block_until_ready(
        textcnn_forward(x, weights, biases, filter_sizes, batch_tile=8))
    assert out.shape == (B, Co * len(filter_sizes))

    # Auto-tiled path (exercises the per-generation VMEM budget / even-grid logic).
    out_auto = jax.block_until_ready(
        textcnn_forward(x, weights, biases, filter_sizes))
    np.testing.assert_allclose(np.asarray(out_auto), np.asarray(out),
                               rtol=1e-6, atol=1e-6)

    # Strict check: reference computed with the SAME bf16-rounded operands (the kernel
    # accumulates exact bf16 products in f32; only the summation order differs).
    x_bf = x.astype(jnp.bfloat16).astype(jnp.float32)
    w_bf = [w.astype(jnp.bfloat16).astype(jnp.float32) for w in weights]
    ref_bf = textcnn_reference(x_bf, w_bf, biases, filter_sizes)
    np.testing.assert_allclose(np.asarray(out), np.asarray(ref_bf), rtol=2e-3, atol=2e-3)

    # Loose check vs. the pure-fp32 PyTorch-equivalent reference (kernel feeds the MXU
    # bf16 operands, as recommended for v5e/v6e/v7x).
    ref32 = textcnn_reference(x, weights, biases, filter_sizes)
    np.testing.assert_allclose(np.asarray(out), np.asarray(ref32), rtol=5e-2, atol=5e-2)

    print("KERNEL_OK")
</pallas_src>

<mosaic_0001>
module attributes {stable_mosaic.version = 11 : i64} {
  func.func @_textcnn_fused_kernel(%arg0: i32, %arg1: memref<8x8x32xbf16, #tpu.memory_space<vmem>>, %arg2: memref<160x128xbf16, #tpu.memory_space<vmem>>, %arg3: memref<1x128xf32, #tpu.memory_space<vmem>>, %arg4: memref<16x128xf32, #tpu.memory_space<vmem>>, %arg5: memref<8x128xf32, #tpu.memory_space<vmem>>) attributes {dimension_semantics = [#tpu.dimension_semantics<parallel>], iteration_bounds = array<i64: 2>, scalar_prefetch = 0 : i64, scratch_operands = 0 : i64, tpu.core_type = #tpu.core_type<tc>, window_params = [{transform_indices = @transform_0, window_bounds = array<i64: 8, 8, 32>}, {pipeline_mode = #tpu.pipeline_mode<synchronous>, transform_indices = @transform_1, window_bounds = array<i64: 160, 128>}, {pipeline_mode = #tpu.pipeline_mode<synchronous>, transform_indices = @transform_2, window_bounds = array<i64: 1, 128>}, {pipeline_mode = #tpu.pipeline_mode<synchronous>, transform_indices = @transform_3, window_bounds = array<i64: 16, 128>}, {transform_indices = @transform_4, window_bounds = array<i64: 8, 128>}]} {
    %c0 = arith.constant 0 : index
    %c0_0 = arith.constant 0 : index
    %c0_1 = arith.constant 0 : index
    %0 = vector.load %arg1[%c0, %c0_0, %c0_1] : memref<8x8x32xbf16, #tpu.memory_space<vmem>>, vector<8x8x32xbf16>
    %cst = arith.constant 0.000000e+00 : bf16
    %1 = vector.broadcast %cst : bf16 to vector<8x4x32xbf16>
    %cst_2 = arith.constant 0.000000e+00 : bf16
    %2 = vector.broadcast %cst_2 : bf16 to vector<8x8x32xbf16>
    %3 = tpu.concatenate %1, %0, %2 in 1 : vector<8x4x32xbf16>, vector<8x8x32xbf16>, vector<8x8x32xbf16> -> vector<8x20x32xbf16>
    %4 = vector.extract_strided_slice %3 {offsets = [0, 0, 0], sizes = [8, 16, 32], strides = [1, 1, 1]} : vector<8x20x32xbf16> to vector<8x16x32xbf16>
    %5 = vector.extract_strided_slice %3 {offsets = [0, 1, 0], sizes = [8, 16, 32], strides = [1, 1, 1]} : vector<8x20x32xbf16> to vector<8x16x32xbf16>
    %6 = vector.extract_strided_slice %3 {offsets = [0, 2, 0], sizes = [8, 16, 32], strides = [1, 1, 1]} : vector<8x20x32xbf16> to vector<8x16x32xbf16>
    %7 = vector.extract_strided_slice %3 {offsets = [0, 3, 0], sizes = [8, 16, 32], strides = [1, 1, 1]} : vector<8x20x32xbf16> to vector<8x16x32xbf16>
    %8 = vector.extract_strided_slice %3 {offsets = [0, 4, 0], sizes = [8, 16, 32], strides = [1, 1, 1]} : vector<8x20x32xbf16> to vector<8x16x32xbf16>
    %9 = tpu.concatenate %4, %5, %6, %7, %8 in 2 : vector<8x16x32xbf16>, vector<8x16x32xbf16>, vector<8x16x32xbf16>, vector<8x16x32xbf16>, vector<8x16x32xbf16> -> vector<8x16x160xbf16>
    %10 = vector.shape_cast %9 : vector<8x16x160xbf16> to vector<128x160xbf16>
    %c0_3 = arith.constant 0 : index
    %c0_4 = arith.constant 0 : index
    %11 = vector.load %arg2[%c0_3, %c0_4] : memref<160x128xbf16, #tpu.memory_space<vmem>>, vector<160x128xbf16>
    %cst_5 = arith.constant dense<0.000000e+00> : vector<128x128xf32>
    %12 = tpu.matmul %10, %11, %cst_5 {dimension_numbers = #tpu.dot_dimension_numbers<[1], [0], [0], [1], [0, 0, 1, 1], [], []>} : vector<128x160xbf16>, vector<160x128xbf16>, vector<128x128xf32> -> vector<128x128xf32>
    %13 = vector.shape_cast %12 : vector<128x128xf32> to vector<8x16x128xf32>
    %c0_6 = arith.constant 0 : index
    %c0_7 = arith.constant 0 : index
    %14 = vector.load %arg4[%c0_6, %c0_7] : memref<16x128xf32, #tpu.memory_space<vmem>>, vector<16x128xf32>
    %15 = vector.shape_cast %14 : vector<16x128xf32> to vector<1x16x128xf32>
    %16 = vector.broadcast %15 : vector<1x16x128xf32> to vector<8x16x128xf32>
    %17 = arith.addf %13, %16 : vector<8x16x128xf32>
    %cst_8 = arith.constant dense<0xFF800000> : vector<8x128xf32>
    %18 = vector.multi_reduction <maximumf>, %17, %cst_8 [1] : vector<8x16x128xf32> to vector<8x128xf32>
    %c0_9 = arith.constant 0 : index
    %c0_10 = arith.constant 0 : index
    %19 = vector.load %arg3[%c0_9, %c0_10] : memref<1x128xf32, #tpu.memory_space<vmem>>, vector<1x128xf32>
    %20 = vector.broadcast %19 : vector<1x128xf32> to vector<8x128xf32>
    %21 = arith.addf %18, %20 : vector<8x128xf32>
    %cst_11 = arith.constant 0.000000e+00 : f32
    %22 = vector.broadcast %cst_11 : f32 to vector<8x128xf32>
    %23 = arith.maximumf %21, %22 : vector<8x128xf32>
    %c0_12 = arith.constant 0 : index
    %c0_13 = arith.constant 0 : index
    %24 = vector.load %arg5[%c0_12, %c0_13] : memref<8x128xf32, #tpu.memory_space<vmem>>, vector<8x128xf32>
    tpu.vector_store %arg5[%c0_12, %c0_13], %23 {strides = array<i32>} : memref<8x128xf32, #tpu.memory_space<vmem>>, vector<8x128xf32>,
    return
  }
  func.func @transform_0(%arg0: i32) -> (i32, i32, i32) {
    %c0_i32 = arith.constant 0 : i32
    %c0_i32_0 = arith.constant 0 : i32
    %c0_i32_1 = arith.constant 0 : i32
    return %arg0, %c0_i32, %c0_i32_0 : i32, i32, i32
  }
  func.func @transform_1(%arg0: i32) -> (i32, i32) {
    %c0_i32 = arith.constant 0 : i32
    %c0_i32_0 = arith.constant 0 : i32
    %c0_i32_1 = arith.constant 0 : i32
    return %c0_i32, %c0_i32_0 : i32, i32
  }
  func.func @transform_2(%arg0: i32) -> (i32, i32) {
    %c0_i32 = arith.constant 0 : i32
    %c0_i32_0 = arith.constant 0 : i32
    %c0_i32_1 = arith.constant 0 : i32
    return %c0_i32, %c0_i32_0 : i32, i32
  }
  func.func @transform_3(%arg0: i32) -> (i32, i32) {
    %c0_i32 = arith.constant 0 : i32
    %c0_i32_0 = arith.constant 0 : i32
    %c0_i32_1 = arith.constant 0 : i32
    return %c0_i32, %c0_i32_0 : i32, i32
  }
  func.func @transform_4(%arg0: i32) -> (i32, i32) {
    %c0_i32 = arith.constant 0 : i32
    %c0_i32_0 = arith.constant 0 : i32
    return %arg0, %c0_i32 : i32, i32
  }
}

</mosaic_0001>

<bundles_post_ra>
// kernel: tpu_custom_call.1
= control target key start
LH: loop header
LB: loop body
LE: loop exit
PB: predicated region body
PF: predicated region fallthrough
CT: control target
= control target key end

     0   :  { %9 = vsyncpa [#allocation3], 0  ;;  %s1767_s0 = inlined_call_operand.hbm [shape: bf16[16,8,32], index: 0, kind: input, shape index: {}]   ;;  %s1768_s1 = inlined_call_operand.hbm [shape: bf16[160,128], index: 1, kind: input, shape index: {}]   ;;  %s1769_s2 = inlined_call_operand.vmem [shape: f32[1,128], index: 2, kind: input, shape index: {}]   ;;  %s1770_s3 = inlined_call_operand.hbm [shape: f32[16,128], index: 3, kind: input, shape index: {}]   ;;  %s1771_s4 = inlined_call_operand.hbm [shape: f32[16,128], index: 4, kind: output, shape index: {}]  }
   0x1   :  { %11 = vsyncpa [#allocation3 + $0x1], 0 }
   0x2   :  { %12 = vsyncpa [#allocation6], 0 }
   0x3   :  { %13 = vsyncpa [#allocation4], 0 }
   0x4   :  { %15 = vsyncpa [#allocation4 + $0x1], 0  ;;  %s1380_s15 = smov 0   ;;  %s1382_s16 = smov 0  }
   0x5   :  { %s1384_s17 = smov 0   ;;  %s1386_s18 = smov 0  }
   0x6 LB: > { %s1401_s19 = sadd.s32 4294967295, %s1343_s18   ;;  %s1002_s20 = sadd.s32 4294967294, %s1343_s18   ;;  %s1343_s18 = sphi %s1386_s18, %s1781_s18   ;;  %s1339_s17 = sphi %s1384_s17, %s1780_s17   ;;  %s1335_s16 = sphi %s1382_s16, %s1779_s16   ;;  %s1331_s15 = sphi %s1380_s15, %s1778_s15  }
   0x7   : > { %p41_p0 = scmp.ne.s32.totalorder %s1335_s16, %s1331_s15  ;;  %p42_p1 = scmp.eq.s32.totalorder %s1401_s19, 0 }
   0x8   : > { %p128_p2 = scmp.eq.s32.totalorder %s1401_s19, 1  ;;  %p134_p3 = scmp.eq.s32.totalorder %s1002_s20, 1 }
   0x9   : > { %p1410_p4 = por %p42_p1, %p41_p0  ;;  %p1003_p5 = scmp.ge.s32.totalorder %s1343_s18, 1 }
   0xa   : > { %p1415_p6 = por %p134_p3, %p41_p0  ;;  %p141_p7 = scmp.lt.s32.totalorder %s1343_s18, 3 }
   0xb   : > { %s152_s25 = sshll.u32 %s1768_s1, 4  ;;  %s1345_s27 = smov [#allocation5]   ;;  %s153_s25 = int_to_ptr.hbm [resolvable:$true] %s152_s25 }
   0xc   : > { %p1423_p8 = pnand %p1003_p5, %p141_p7  ;;  %s154_s28 = sshll.u32 %s1345_s27, 4  ;;  %s155_s28 = int_to_ptr.vmem [resolvable:$true] %s154_s28 }
   0xd   : > { %s169_s5 = sshll.u32 %s1770_s3, 4  ;;  %s1346_s6 = smov 64   ;;  %s170_s5 = int_to_ptr.hbm [resolvable:$true] %s169_s5 }
   0xe   : > { %p1119_p9 = pneg %p1423_p8  ;;  %s1347_s7 = smov 4  }
   0xf   : > { %s1348_s8 = smov [#allocation7]   ;;  %s1349_s10 = smov 128  }
  0x10   : > { %p1120_p10 = pnand %p1119_p9, %p42_p1  ;;  %s171_s9 = sshll.u32 %s1348_s8, 4  ;;  %s172_s9 = int_to_ptr.vmem [resolvable:$true] %s171_s9 }
  0x11   : > { %s1350_s11 = smov 8   ;;  %s1439_s12 = sadd.s32 1, %s1343_s18  }
  0x12   : > { %1122 = dma.hbm_to_vmem [thread:$0]  (!%p1120_p10), %s153_s25, 1280, %s155_s28, [#allocation6], %s1346_s6, %s1346_s6, %s1347_s7  }
  0x13   : > { %1125 = dma.hbm_to_vmem [thread:$0]  (!%p1120_p10), %s170_s5, 256, %s172_s9, [#allocation6], %s1349_s10, %s1349_s10, %s1350_s11  }
  0x14   : > { %s25_s13 = ssub.s32 %s1343_s18, %s1439_s12  ;;  %s28_s14 = sadd.s32 1, %s1339_s17 }
  0x15   : > { %p26_p12 = scmp.eq.s32.totalorder %s25_s13, 0  ;;  %p35_p13 = scmp.ne.s32.totalorder %s1339_s17, %s1335_s16 }
  0x16   : > { %p36_p0 = scmp.eq.s32.totalorder %s1343_s18, 0  ;;  %p1136_p7 = scmp.lt.s32.totalorder %s1343_s18, 2 }
  0x17   : > { %s1448_s20 = scalar_select %p26_p12, %s1339_s17, %s28_s14  }
  0x18   : > { %p37_p3 = por %p36_p0, %p35_p13  ;;  %p1452_p5 = por %p128_p2, %p35_p13 }
  0x19   : > { %s185_s24 = sand.u32 1, %s1339_s17   ;;  %s1067_s27 = sshll.u32 %s1343_s18, 5 }
  0x1a   : > { %s1007_s25 = sshll.u32 %s185_s24, 5  ;;  %s194_s30 = scalar_lea.hbm %s1767_s0, %s1067_s27 }
  0x1b   : > { %s189_s5 = scalar_lea.vmem [#allocation2], %s1007_s25  ;;  %s195_s9 = sshll.u32 %s194_s30, 4  ;;  %s196_s9 = int_to_ptr.hbm [resolvable:$true] %s195_s9 }
  0x1c   : > { %s197_s8 = sshll.u32 %s189_s5, 4  ;;  %p1462_p9 = pnand %p1136_p7, %p37_p3  ;;  %s198_s8 = int_to_ptr.vmem [resolvable:$true] %s197_s8 }
  0x1d   : > { %s186_s11 = scalar_lea.sflag [#allocation3], %s185_s24  ;;  %s1243_s13 = sshra.s32 %s196_s9, 4  ;;  %s1244_s13 = int_to_ptr.hbm [resolvable:$true] %s1243_s13 }
  0x1e   : > { %s1245_s14 = scalar_lea.hbm %s1244_s13, 32  ;;  %p1247_p10 = pneg %p1462_p9 }
  0x1f   : > { %p1246_p2 = scmp.ne.s32.totalorder %s1244_s13, %s1245_s14  ;;  %s1250_s28 = scalar_lea.hbm %s1767_s0, 64 }
  0x20   : > { %p1251_p0 = scmp.lt.s32.totalorder %s1244_s13, %s1767_s0  ;;  %p1252_p3 = scmp.lt.s32.totalorder %s1250_s28, %s1245_s14 }
  0x21   : > { %p1248_p12 = pnand %p1247_p10, %p1246_p2 }
  0x22   : > { %p1253_p7 = por %p1252_p3, %p1251_p0 }
  0x23   : > { %p1249_p13 = pneg %p1248_p12 }
  0x25   : > { %p1254_p11 = pnand %p1253_p7, %p1249_p13 }
  0x27   : > { %1257 = shalt.err (!%p1254_p11)
}
  0x28   : > { %1129 = dma.hbm_to_vmem [thread:$0]  (!%p1462_p9), %s196_s9, 512, %s198_s8, %s186_s11, %s1346_s6, %s1346_s6, %s1347_s7  }
  0x29   : > { %209 = sbr.rel (%p1423_p8) target bundleno = 406 (0x196), region = 36  ;;  %s1482_s24 = sand.u32 (!%p1423_p8), 1, %s1335_s16  }
  0x2a   : > { %s1011_s5 = sshll.u32 (!%p1423_p8), %s1482_s24, 5  ;;  %s212_s13 = scalar_lea.sflag (!%p1423_p8), [#allocation3], %s1482_s24 }
  0x2b   : > { %s1486_s14 = scalar_lea.vmem (!%p1423_p8), [#allocation2], %s1011_s5 }
  0x2e   : > { %1318 = dma.done.wait (%p1410_p4), %s212_s13, 512  }
  0x2f   : > { %1320 = vsyncadd (%p1410_p4), %s212_s13, 4294966784 }
  0x30   : > { %1322 = dma.done.wait (%p42_p1), [#allocation6], 1536  }
  0x31   : > { %1324 = vsyncadd (%p42_p1), [#allocation6], 4294965760  ;;  %v1095_v0 = vld [vmem:[%s1486_s14 + $0x10] sm:$0xff]   ;;  %v1079_v1 = vld [vmem:[%s1486_s14] sm:$0xff]   ;;  %vm293_vm0 = vcmask 1041408   ;;  %vm311_vm1 = vcmask 1045504  }
  0x32   : > { %v1088_v2 = vunpack.c.l.b16 %v1095_v0  ;;  %v1080_v3 = vunpack.c.l.b16 %v1079_v1  ;;  %v1089_v4 = vunpack.c.h.b16 %v1095_v0  ;;  %v1081_v5 = vunpack.c.h.b16 %v1079_v1  ;;  %v1517_v29 = vld [vmem:[%s1486_s14 + $0x18] sm:$0xff]   ;;  %s1352_s21 = smov 64   ;;  %v1094_v41 = vld [vmem:[%s1486_s14 + $0x8] sm:$0xff]   ;;  %s1353_s26 = smov 32  }
  0x33   : > { %v1351_v22 = vmov 0   ;;  %vm320_vm2 = vsmask.f32 7424  ;;  %vm405_vm3 = vcmask 1046528   ;;  %v1092_v40 = vunpack.c.l.b16 %v1517_v29  ;;  %s1354_s6 = smov 96   ;;  %s1014_s9 = sshll.u32 %s1482_s24, 3 }
  0x34   : > { %v281_v6 = vpack.c.b16 %v1088_v2, %v1088_v2  ;;  %v277_v7 = vpack.c.b16 %v1080_v3, %v1080_v3  ;;  %v282_v8 = vpack.c.b16 %v1089_v4, %v1089_v4  ;;  %v278_v11 = vpack.c.b16 %v1081_v5, %v1081_v5  ;;  %s1064_s10 = sshll.u32 %s1401_s19, 3  ;;  %s250_s19 = scalar_lea.vmem [#allocation8], %s1014_s9 }
  0x35   : > { %v1510_v23 = vrot.slane %v1351_v22, 1  ;;  %v1513_v27 = vrot.slane %v1351_v22, 2  ;;  %vm439_vm4 = vsmask.f32 6400  ;;  %v1084_v49 = vunpack.c.l.b16 %v1094_v41  ;;  %s908_s25 = scalar_lea.hbm %s1771_s4, %s1064_s10  ;;  %s910_s28 = sshll.u32 %s250_s19, 4  ;;  %s911_s28 = int_to_ptr.vmem [resolvable:$true] %s910_s28 }
  0x36   : > { %v289_v9 = vrot.slane %v281_v6, 6  ;;  %v285_v10 = vrot.slane %v277_v7, 6  ;;  %v290_v14 = vrot.slane %v282_v8, 6  ;;  %v286_v21 = vrot.slane %v278_v11, 6  ;;  %s912_s29 = sshll.u32 %s908_s25, 4  ;;  %s898_s30 = scalar_lea.sflag [#allocation4], %s1482_s24  ;;  %s913_s29 = int_to_ptr.hbm [resolvable:$true] %s912_s29 }
  0x37   : > { %v1536_v42 = vor.u32 %v1513_v27, %v1510_v23  ;;  %v283_v51 = vpack.c.b16 %v1092_v40, %v1092_v40  ;;  %v279_v59 = vpack.c.b16 %v1084_v49, %v1084_v49  ;;  %v1093_v11 = vunpack.c.h.b16 %v1517_v29  ;;  %v1076_v40 = vld [vmem:[#allocation5 + $0x40] sm:$0xff]  ;;  %s1287_s5 = sshra.s32 %s913_s29, 4  ;;  %s1288_s5 = int_to_ptr.hbm [resolvable:$true] %s1287_s5 }
  0x38   : > { %v304_v12 = vsel %vm293_vm0, 0, %v289_v9  ;;  %v296_v13 = vsel %vm293_vm0, 0, %v285_v10  ;;  %v306_v26 = vsel %vm293_vm0, 0, %v290_v14  ;;  %v298_v36 = vsel %vm293_vm0, 0, %v286_v21  ;;  %s1289_s13 = scalar_lea.hbm %s1288_s5, 8  ;;  %p1294_p11 = scmp.lt.s32.totalorder %s1288_s5, %s1771_s4 }
  0x39   : > { %v1501_v15 = vsel %vm311_vm1, %v304_v12, 0  ;;  %v1504_v16 = vsel %vm311_vm1, %v296_v13, 0  ;;  %v1520_v34 = vsel %vm311_vm1, %v306_v26, 0  ;;  %v1541_v47 = vsel %vm311_vm1, %v298_v36, 0  ;;  %v1077_v36 = vld [vmem:[#allocation5 + $0x48] sm:$0xff]  ;;  %p1290_p1 = scmp.ne.s32.totalorder %s1288_s5, %s1289_s13 }
  0x3a   : > { %v352_v17 = vshrl.u32 %v1501_v15, 16  ;;  %v354_v18 = vshll.u32 %v1501_v15, 16  ;;  %v321_v19 = vshrl.u32 %v1504_v16, 16  ;;  %v323_v20 = vshll.u32 %v1504_v16, 16  ;;  %729 = vmatpush.bf16.msra.mxu1 %v1077_v36  ;;  %1105 = vmatpush.bf16.msra.mxu3 %v1077_v36 }
  0x3b   : > { %v406_v28 = vrot.slane %v1504_v16, 1  ;;  %v415_v44 = vrot.slane %v1501_v15, 1  ;;  %v361_v46 = vshll.u32 %v1520_v34, 16  ;;  %v333_v50 = vshll.u32 %v1541_v47, 16  ;;  %p1291_p4 = pnand %p1290_p1, %p1452_p5 }
  0x3c   : > { %v356_v24 = vrot.slane %v354_v18, 1  ;;  %v325_v25 = vrot.slane %v323_v20, 1  ;;  %v461_v32 = vrot.slane %v352_v17, 1  ;;  %v462_v33 = vrot.slane %v354_v18, 2 }
  0x3d   : > { %v408_v35 = vsel %vm405_vm3, %v406_v28, %v1510_v23  ;;  %v440_v39 = vrot.slane %v321_v19, 1  ;;  %v441_v43 = vrot.slane %v323_v20, 2  ;;  %v331_v53 = vshrl.u32 %v1541_v47, 16  ;;  %p1292_p8 = pneg %p1291_p4 }
  0x3e   : > { %v357_v30 = vor.u32 %v356_v24, %v352_v17  ;;  %v326_v31 = vor.u32 %v325_v25, %v321_v19  ;;  %423 = vrot.lane.b32.xlu2 %v408_v35, %s1352_s21  ;;  %v463_v45 = vor.u32 %v462_v33, %v461_v32  ;;  %v335_v54 = vrot.slane %v333_v50, 1  ;;  %730 = vmatpush.bf16.msra.mxu1 %v1076_v40 }
  0x3f   : > { %v442_v48 = vor.u32 %v441_v43, %v440_v39  ;;  %v416_v55 = vsel %vm405_vm3, %v415_v44, %v1510_v23  ;;  %v359_v57 = vshrl.u32 %v1520_v34, 16  ;;  %v363_v58 = vrot.slane %v361_v46, 1  ;;  %v1074_v43 = vld [vmem:[#allocation5 + $0x30] sm:$0xff]  ;;  %1106 = vmatpush.bf16.msra.mxu3 %v1076_v40 }
  0x40   : > { %v358_v37 = vsel %vm320_vm2, %v357_v30, %v1510_v23  ;;  %v330_v38 = vsel %vm320_vm2, %v326_v31, %v1510_v23  ;;  %v464_v56 = vsel %vm439_vm4, %v463_v45, %v1536_v42  ;;  %v291_v60 = vrot.slane %v283_v51, 6 }
  0x41   : > { %388 = vrot.lane.b32.xlu0 %v358_v37, %s1353_s26  ;;  %380 = vrot.lane.b32.xlu1 %v330_v38, %s1353_s26  ;;  %v448_v52 = vsel %vm439_vm4, %v442_v48, %v1536_v42  ;;  %v336_v61 = vor.u32 %v335_v54, %v331_v53  ;;  %v364_v62 = vor.u32 %v363_v58, %v359_v57  ;;  %v417_v63 = vrot.slane %v1520_v34, 1  ;;  %v1075_v37 = vld [vmem:[#allocation5 + $0x38] sm:$0xff] }
  0x42   : > { %v287_v0 = vrot.slane %v279_v59, 6  ;;  %v308_v1 = vsel %vm293_vm0, 0, %v291_v60  ;;  %v449_v3 = vrot.slane %v331_v53, 1  ;;  %v450_v4 = vrot.slane %v333_v50, 2  ;;  %674 = vmatpush.bf16.msra.mxu0 %v1075_v37  ;;  %1097 = vmatpush.bf16.msra.mxu2 %v1075_v37  ;;  %v1068_v37 = vld [vmem:[#allocation5] sm:$0xff] }
  0x43   : > { %v337_v2 = vsel %vm320_vm2, %v336_v61, %v1510_v23  ;;  %v365_v5 = vsel %vm320_vm2, %v364_v62, %v1510_v23  ;;  %v418_v6 = vsel %vm405_vm3, %v417_v63, %v1510_v23  ;;  %v465_v7 = vrot.slane %v359_v57, 1  ;;  %v1072_v63 = vld [vmem:[#allocation5 + $0x20] sm:$0xff] }
  0x44   : > { %v466_v8 = vrot.slane %v361_v46, 2  ;;  %v1564_v9 = vsel %vm311_vm1, %v308_v1, 0  ;;  %v300_v10 = vsel %vm293_vm0, 0, %v287_v0  ;;  %v451_v12 = vor.u32 %v450_v4, %v449_v3 }
  0x45   : > { %v1085_v13 = vunpack.c.h.b16 %v1094_v41  ;;  %v409_v17 = vrot.slane %v1541_v47, 1  ;;  %v368_v18 = vshll.u32 %v1564_v9, 16  ;;  %v1574_v19 = vsel %vm311_vm1, %v300_v10, 0 }
  0x46   : > { %477 = vrot.lane.b32.xlu2 %v448_v52, %s1354_s6  ;;  %v467_v14 = vor.u32 %v466_v8, %v465_v7  ;;  %v340_v20 = vshll.u32 %v1574_v19, 16  ;;  %v284_v21 = vpack.c.b16 %v1093_v11, %v1093_v11  ;;  %v452_v22 = vsel %vm439_vm4, %v451_v12, %v1536_v42  ;;  %675 = vmatpush.bf16.msra.mxu0 %v1074_v43  ;;  %v1071_v7 = vld [vmem:[#allocation5 + $0x18] sm:$0xff] }
  0x47   : > { %v280_v24 = vpack.c.b16 %v1085_v13, %v1085_v13  ;;  %v338_v25 = vshrl.u32 %v1574_v19, 16  ;;  %v410_v29 = vsel %vm405_vm3, %v409_v17, %v1510_v23  ;;  %v366_v30 = vshrl.u32 %v1564_v9, 16  ;;  %1098 = vmatpush.bf16.msra.mxu2 %v1074_v43  ;;  %v1070_v13 = vld [vmem:[#allocation5 + $0x10] sm:$0xff] }
  0x48   : > { %v342_v26 = vrot.slane %v340_v20, 1  ;;  %v468_v28 = vsel %vm439_vm4, %v467_v14, %v1536_v42  ;;  %v370_v31 = vrot.slane %v368_v18, 1  ;;  %v292_v32 = vrot.slane %v284_v21, 6 }
  0x49   : > { %431 = vrot.lane.b32.xlu0 %v416_v55, %s1352_s21  ;;  %485 = vrot.lane.b32.xlu1 %v464_v56, %s1354_s6  ;;  %v288_v33 = vrot.slane %v280_v24, 6  ;;  %v419_v39 = vrot.slane %v1564_v9, 1  ;;  %v494_v41 = vrot.slane %v1504_v16, 2  ;;  %v453_v48 = vrot.slane %v338_v25, 1  ;;  %v1073_v56 = vld [vmem:[#allocation5 + $0x28] sm:$0xff] }
  0x4a   : > { %v343_v35 = vor.u32 %v342_v26, %v338_v25  ;;  %v371_v38 = vor.u32 %v370_v31, %v366_v30  ;;  %v310_v44 = vsel %vm293_vm0, 0, %v292_v32  ;;  %v454_v49 = vrot.slane %v340_v20, 2  ;;  %676 = vmatpush.bf16.msra.mxu0 %v1073_v56 }
  0x4b   : > { %v302_v45 = vsel %vm293_vm0, 0, %v288_v33  ;;  %v420_v51 = vsel %vm405_vm3, %v419_v39, %v1510_v23  ;;  %v469_v52 = vrot.slane %v366_v30, 1  ;;  %v470_v53 = vrot.slane %v368_v18, 2  ;;  %1099 = vmatpush.bf16.msra.mxu2 %v1073_v56  ;;  %v1069_v33 = vld [vmem:[#allocation5 + $0x8] sm:$0xff] }
  0x4c   : > { %v344_v46 = vsel %vm320_vm2, %v343_v35, %v1510_v23  ;;  %v372_v50 = vsel %vm320_vm2, %v371_v38, %v1510_v23  ;;  %v1599_v54 = vsel %vm311_vm1, %v310_v44, 0  ;;  %v496_v55 = vsel %vm311_vm1, %v494_v41, %v1513_v27 }
  0x4d   : > { %vm511_vm5 = vcmask 261120   ;;  %v1604_v57 = vsel %vm311_vm1, %v302_v45, 0  ;;  %v455_v58 = vor.u32 %v454_v49, %v453_v48  ;;  %v471_v60 = vor.u32 %v470_v53, %v469_v52 }
  0x4e   : > { %382 = vrot.lane.b32.xlu2 %v337_v2, %s1353_s26  ;;  %v347_v59 = vshll.u32 %v1604_v57, 16  ;;  %v411_v61 = vrot.slane %v1574_v19, 1  ;;  %v375_v62 = vshll.u32 %v1599_v54, 16  ;;  %1055 = vmatmul.msk.bf16.vlgmr.msra.gmra.mxu1 %vm511_vm5, %v496_v55  ;;  %v345_v1 = vshrl.u32 %v1604_v57, 16 }
  0x4f   : > { %v456_v0 = vsel %vm439_vm4, %v455_v58, %v1536_v42  ;;  %v472_v3 = vsel %vm439_vm4, %v471_v60, %v1536_v42  ;;  %677 = vmatpush.bf16.msra.mxu0 %v1072_v63  ;;  %1100 = vmatpush.bf16.msra.mxu2 %v1072_v63  ;;  %v421_v11 = vrot.slane %v1599_v54, 1  ;;  %v497_v12 = vrot.slane %v1541_v47, 2 }
  0x50   : > { %v349_v2 = vrot.slane %v347_v59, 1  ;;  %v412_v4 = vsel %vm405_vm3, %v411_v61, %v1510_v23  ;;  %v457_v17 = vrot.slane %v345_v1, 1  ;;  %v458_v18 = vrot.slane %v347_v59, 2 }
  0x51   : > { %390 = vrot.lane.b32.xlu0 %v365_v5, %s1353_s26  ;;  %433 = vrot.lane.b32.xlu1 %v418_v6, %s1352_s21  ;;  %v373_v5 = vshrl.u32 %v1599_v54, 16  ;;  %v377_v6 = vrot.slane %v375_v62, 1  ;;  %v422_v21 = vsel %vm405_vm3, %v421_v11, %v1510_v23  ;;  %v474_v24 = vrot.slane %v375_v62, 2 }
  0x52   : > { %v350_v8 = vor.u32 %v349_v2, %v345_v1  ;;  %v498_v25 = vsel %vm311_vm1, %v497_v12, %v1513_v27  ;;  %v459_v26 = vor.u32 %v458_v18, %v457_v17  ;;  %v499_v35 = vrot.slane %v1574_v19, 2 }
  0x53   : > { %v378_v10 = vor.u32 %v377_v6, %v373_v5  ;;  %678 = vmatpush.bf16.msra.mxu0 %v1071_v7  ;;  %1101 = vmatpush.bf16.msra.mxu2 %v1071_v7  ;;  %v503_v38 = vrot.slane %v1501_v15, 2  ;;  %v505_v40 = vrot.slane %v1520_v34, 2  ;;  %vm528_vm6 = vcmask 523264  }
  0x54   : > { %v351_v14 = vsel %vm320_vm2, %v350_v8, %v1510_v23  ;;  %v460_v30 = vsel %vm439_vm4, %v459_v26, %v1536_v42  ;;  %v500_v36 = vsel %vm311_vm1, %v499_v35, %v1513_v27  ;;  %vm545_vm7 = vcmask 785408  }
  0x55   : > { %v379_v20 = vsel %vm320_vm2, %v378_v10, %v1510_v23  ;;  %v504_v39 = vsel %vm311_vm1, %v503_v38, %v1513_v27  ;;  %v506_v41 = vsel %vm311_vm1, %v505_v40, %v1513_v27  ;;  %v507_v48 = vrot.slane %v1564_v9, 2 }
  0x56   : > { %479 = vrot.lane.b32.xlu2 %v452_v22, %s1354_s6  ;;  %v473_v22 = vrot.slane %v373_v5, 1  ;;  %1060 = vmatmul.msk.bf16.vlgmr.msra.gmra.mxu3 %vm511_vm5, %v506_v41  ;;  %v509_v63 = vrot.slane %v1599_v54, 2  ;;  %vm875_vm8 = vcmask 1041409   ;;  %vm878_vm9 = vcmask 1042434  }
  0x57   : > { %679 = vmatpush.bf16.msra.mxu0 %v1070_v13  ;;  %1102 = vmatpush.bf16.msra.mxu2 %v1070_v13  ;;  %vm881_vm10 = vcmask 1043459   ;;  %vm884_vm11 = vcmask 1044484   ;;  %vm887_vm12 = vcmask 1045509   ;;  %vm890_vm13 = vcmask 1046534  }
  0x58   : > { %vm893_vm14 = vcmask 1047559  }
  0x59   : > { %487 = vrot.lane.b32.xlu0 %v468_v28, %s1354_s6  ;;  %425 = vrot.lane.b32.xlu1 %v410_v29, %s1352_s21  ;;  %v475_v28 = vor.u32 %v474_v24, %v473_v22  ;;  %v413_v29 = vrot.slane %v1604_v57, 1 }
  0x5b   : > { %v476_v31 = vsel %vm439_vm4, %v475_v28, %v1536_v42  ;;  %v414_v32 = vsel %vm405_vm3, %v413_v29, %v1510_v23  ;;  %680 = vmatpush.bf16.msra.mxu0 %v1069_v33  ;;  %1103 = vmatpush.bf16.msra.mxu2 %v1069_v33  ;;  %v501_v42 = vrot.slane %v1604_v57, 2 }
  0x5d   : > { %v502_v23 = vsel %vm311_vm1, %v501_v42, %v1513_v27 }
  0x5e   : > { %384 = vrot.lane.b32.xlu2 %v344_v46, %s1353_s26  ;;  %1056 = vmatmul.msk.bf16.gmra.mxu1 %vm511_vm5, %v498_v25 }
  0x5f   : > { %681 = vmatpush.bf16.msra.mxu0 %v1068_v37  ;;  %1104 = vmatpush.bf16.msra.mxu2 %v1068_v37 }
  0x61   : > { %392 = vrot.lane.b32.xlu0 %v372_v50, %s1353_s26  ;;  %435 = vrot.lane.b32.xlu1 %v420_v51, %s1352_s21  ;;  %v508_v51 = vsel %vm311_vm1, %v507_v48, %v1513_v27 }
  0x66   : > { %481 = vrot.lane.b32.xlu2 %v456_v0, %s1354_s6  ;;  %1061 = vmatmul.msk.bf16.gmra.mxu3 %vm511_vm5, %v508_v51  ;;  %v510_v0 = vsel %vm311_vm1, %v509_v63, %v1513_v27 }
  0x69   : > { %489 = vrot.lane.b32.xlu0 %v472_v3, %s1354_s6  ;;  %427 = vrot.lane.b32.xlu1 %v412_v4, %s1352_s21 }
  0x6e   : > { %386 = vrot.lane.b32.xlu2 %v351_v14, %s1353_s26  ;;  %1057 = vmatmul.msk.bf16.gmra.mxu1 %vm511_vm5, %v500_v36 }
  0x71   : > { %394 = vrot.lane.b32.xlu0 %v379_v20, %s1353_s26  ;;  %437 = vrot.lane.b32.xlu1 %v422_v21, %s1352_s21  ;;  %s1293_s26 = scalar_lea.hbm %s1771_s4, 16 }
  0x72   : > { %p1295_p9 = scmp.lt.s32.totalorder %s1293_s26, %s1289_s13 }
  0x74   : > { %p1296_p2 = por %p1295_p9, %p1294_p11 }
  0x76   : > { %483 = vrot.lane.b32.xlu2 %v460_v30, %s1354_s6  ;;  %1062 = vmatmul.msk.bf16.gmra.mxu3 %vm511_vm5, %v510_v0  ;;  %p1297_p10 = pnand %p1296_p2, %p1292_p8 }
  0x79   : > { %491 = vrot.lane.b32.xlu0 %v476_v31, %s1354_s6  ;;  %429 = vrot.lane.b32.xlu1 %v414_v32, %s1352_s21 }
  0x7e   : > { %1058 = vmatmul.msk.bf16.gmra.mxu1 %vm511_vm5, %v502_v23 }
  0x8e   : > { %1059 = vmatmul.msk.bf16.gmra.mxu1 %vm511_vm5, %v504_v39 }
  0x98   : > { %v424_v43 = vpop.permute.xlu2 %423 }
  0xa0   : > { %v478_v44 = vpop.permute.xlu2 %477 }
  0xa8   : > { %v383_v53 = vpop.permute.xlu2 %382 }
  0xa9   : > { %v515_v2 = vsel %vm511_vm5, %v1541_v47, %v383_v53 }
  0xb0   : > { %v480_v60 = vpop.permute.xlu2 %479 }
  0xb3   : > { %v389_v45 = vpop.permute.xlu0 %388  ;;  %v381_v46 = vpop.permute.xlu1 %380 }
  0xb4   : > { %v513_v49 = vsel %vm511_vm5, %v1504_v16, %v381_v46  ;;  %v521_v55 = vsel %vm511_vm5, %v1501_v15, %v389_v45 }
  0xb5   : > { %v530_v50 = vsel %vm528_vm6, %v513_v49, %v424_v43 }
  0xb6   : > { %v547_v52 = vsel %vm545_vm7, %v530_v50, %v478_v44 }
  0xb7   : > { %682 = vmatmul.bf16.vlgmr.msra.gmra.mxu0 %v547_v52 }
  0xb8   : > { %v385_v7 = vpop.permute.xlu2 %384 }
  0xb9   : > { %v517_v47 = vsel %vm511_vm5, %v1574_v19, %v385_v7 }
  0xbb   : > { %v432_v56 = vpop.permute.xlu0 %431  ;;  %v486_v58 = vpop.permute.xlu1 %485 }
  0xbc   : > { %v538_v59 = vsel %vm528_vm6, %v521_v55, %v432_v56 }
  0xbd   : > { %v559_v16 = vsel %vm545_vm7, %v538_v59, %v486_v58  ;;  %v1708_v58 = vld [vmem:[#allocation7 + $0x8] sm:$0xff] }
  0xbe   : > { %702 = vmatmul.bf16.vlgmr.msra.gmra.mxu2 %v559_v16  ;;  %v1711_v16 = vld [vmem:[#allocation7] sm:$0xff] }
  0xc0   : > { %v482_v11 = vpop.permute.xlu2 %481 }
  0xc3   : > { %v391_v61 = vpop.permute.xlu0 %390  ;;  %v434_v62 = vpop.permute.xlu1 %433 }
  0xc4   : > { %v523_v15 = vsel %vm511_vm5, %v1520_v34, %v391_v61 }
  0xc5   : > { %v540_v1 = vsel %vm528_vm6, %v523_v15, %v434_v62 }
  0xc8   : > { %v387_v21 = vpop.permute.xlu2 %386 }
  0xc9   : > { %v519_v19 = vsel %vm511_vm5, %v1604_v57, %v387_v21 }
  0xcb   : > { %v488_v3 = vpop.permute.xlu0 %487  ;;  %v426_v4 = vpop.permute.xlu1 %425 }
  0xcc   : > { %v532_v5 = vsel %vm528_vm6, %v515_v2, %v426_v4  ;;  %v562_v6 = vsel %vm545_vm7, %v540_v1, %v488_v3  ;;  %v732_v33 = vpop.f32.mrf.mxu1 }
  0xcd   : > { %v550_v8 = vsel %vm545_vm7, %v532_v5, %v480_v60 }
  0xce   : > { %687 = vmatmul.bf16.gmra.mxu0 %v550_v8  ;;  %707 = vmatmul.bf16.gmra.mxu2 %v562_v6 }
  0xd0   : > { %v484_v25 = vpop.permute.xlu2 %483 }
  0xd3   : > { %v393_v27 = vpop.permute.xlu0 %392  ;;  %v436_v10 = vpop.permute.xlu1 %435 }
  0xd4   : > { %v525_v34 = vsel %vm511_vm5, %v1564_v9, %v393_v27  ;;  %v734_v35 = vpop.f32.mrf.mxu1 }
  0xd5   : > { %v542_v12 = vsel %vm528_vm6, %v525_v34, %v436_v10 }
  0xd9   : > { %v757_v40 = vpop.f32.mrf.mxu3 }
  0xdb   : > { %v490_v13 = vpop.permute.xlu0 %489  ;;  %v428_v14 = vpop.permute.xlu1 %427 }
  0xdc   : > { %v534_v17 = vsel %vm528_vm6, %v517_v47, %v428_v14  ;;  %v565_v18 = vsel %vm545_vm7, %v542_v12, %v490_v13  ;;  %v737_v36 = vpop.f32.mrf.mxu1 }
  0xdd   : > { %v553_v20 = vsel %vm545_vm7, %v534_v17, %v482_v11 }
  0xde   : > { %692 = vmatmul.bf16.gmra.mxu0 %v553_v20  ;;  %712 = vmatmul.bf16.gmra.mxu2 %v565_v18 }
  0xe1   : > { %v759_v46 = vpop.f32.mrf.mxu3 }
  0xe3   : > { %v395_v22 = vpop.permute.xlu0 %394  ;;  %v438_v24 = vpop.permute.xlu1 %437 }
  0xe4   : > { %v527_v9 = vsel %vm511_vm5, %v1599_v54, %v395_v22  ;;  %v739_v54 = vpop.f32.mrf.mxu1 }
  0xe5   : > { %v544_v26 = vsel %vm528_vm6, %v527_v9, %v438_v24 }
  0xe9   : > { %v762_v52 = vpop.f32.mrf.mxu3 }
  0xeb   : > { %v492_v28 = vpop.permute.xlu0 %491  ;;  %v430_v29 = vpop.permute.xlu1 %429 }
  0xec   : > { %v536_v30 = vsel %vm528_vm6, %v519_v19, %v430_v29  ;;  %v568_v31 = vsel %vm545_vm7, %v544_v26, %v492_v28  ;;  %v742_v42 = vpop.f32.mrf.mxu1 }
  0xed   : > { %v556_v32 = vsel %vm545_vm7, %v536_v30, %v484_v25 }
  0xee   : > { %697 = vmatmul.bf16.gmra.mxu0 %v556_v32  ;;  %717 = vmatmul.bf16.gmra.mxu2 %v568_v31 }
  0xf1   : > { %v764_v34 = vpop.f32.mrf.mxu3 }
  0xf4   : > { %v744_v37 = vpop.f32.mrf.mxu1 }
  0xfc   : > { %v1704_v38 = vpop.f32.mrf.mxu1 }
 0x104   : > { %v1706_v41 = vpop.f32.mrf.mxu1 }
 0x10c   : > { %v752_v48 = vpop.f32.mrf.mxu1 }
 0x114   : > { %v754_v55 = vpop.f32.mrf.mxu1 }
 0x134   : > { %v683_v23 = vpop.f32.mrf.mxu0 }
 0x135   : > { %v733_v0 = vadd.f32 %v732_v33, %v683_v23  ;;  %v767_v23 = vpop.f32.mrf.mxu3 }
 0x137   : > { %v774_v10 = vadd.f32 %v1711_v16, %v733_v0 }
 0x13c   : > { %v685_v39 = vpop.f32.mrf.mxu0 }
 0x13d   : > { %v735_v60 = vadd.f32 %v734_v35, %v685_v39 }
 0x13f   : > { %v775_v5 = vadd.f32 %v1708_v58, %v735_v60 }
 0x141   : > { %v703_v57 = vpop.f32.mrf.mxu2  ;;  %v790_v17 = vmax.f32 %v774_v10, %v775_v5 }
 0x142   : > { %v753_v15 = vadd.f32 %v752_v48, %v703_v57 }
 0x143   : > { %v791_v19 = vrot.slane %v790_v17, 4 }
 0x144   : > { %v782_v11 = vadd.f32 %v1711_v16, %v753_v15  ;;  %v769_v15 = vpop.f32.mrf.mxu3 }
 0x149   : > { %v705_v43 = vpop.f32.mrf.mxu2 }
 0x14a   : > { %v755_v61 = vadd.f32 %v754_v55, %v705_v43 }
 0x14b   : > { %v688_v44 = vpop.f32.mrf.mxu0 }
 0x14c   : > { %v738_v56 = vadd.f32 %v737_v36, %v688_v44  ;;  %v783_v6 = vadd.f32 %v1708_v58, %v755_v61 }
 0x14e   : > { %v776_v62 = vadd.f32 %v1711_v16, %v738_v56  ;;  %v818_v18 = vmax.f32 %v782_v11, %v783_v6 }
 0x150   : > { %v819_v28 = vrot.slane %v818_v18, 4 }
 0x151   : > { %v708_v45 = vpop.f32.mrf.mxu2 }
 0x152   : > { %v758_v2 = vadd.f32 %v757_v40, %v708_v45 }
 0x153   : > { %v690_v49 = vpop.f32.mrf.mxu0 }
 0x154   : > { %v740_v51 = vadd.f32 %v739_v54, %v690_v49  ;;  %v784_v12 = vadd.f32 %v1711_v16, %v758_v2  ;;  %v792_v54 = vmax.f32 %v790_v17, %v791_v19 }
 0x156   : > { %v777_v59 = vadd.f32 %v1708_v58, %v740_v51  ;;  %v793_v45 = vrot.slane %v792_v54, 2 }
 0x158   : > { %v797_v3 = vmax.f32 %v776_v62, %v777_v59  ;;  %v794_v59 = vmax.f32 %v792_v54, %v793_v45 }
 0x159   : > { %v710_v50 = vpop.f32.mrf.mxu2 }
 0x15a   : > { %v760_v63 = vadd.f32 %v759_v46, %v710_v50  ;;  %v798_v47 = vrot.slane %v797_v3, 4  ;;  %v795_v5 = vrot.slane %v794_v59, 1 }
 0x15b   : > { %v693_v53 = vpop.f32.mrf.mxu0 }
 0x15c   : > { %v743_v4 = vadd.f32 %v742_v42, %v693_v53  ;;  %v785_v8 = vadd.f32 %v1708_v58, %v760_v63  ;;  %v799_v9 = vmax.f32 %v797_v3, %v798_v47  ;;  %v820_v42 = vmax.f32 %v818_v18, %v819_v28 }
 0x15e   : > { %v778_v13 = vadd.f32 %v1711_v16, %v743_v4  ;;  %v825_v20 = vmax.f32 %v784_v12, %v785_v8  ;;  %v800_v35 = vrot.slane %v799_v9, 2  ;;  %v821_v46 = vrot.slane %v820_v42, 2  ;;  %v1182_v8 = vld [vmem:[%s1769_s2] ss:$0 sm:$0xff] }
 0x160   : > { %v826_v30 = vrot.slane %v825_v20, 4  ;;  %v801_v43 = vmax.f32 %v799_v9, %v800_v35  ;;  %v822_v60 = vmax.f32 %v820_v42, %v821_v46 }
 0x161   : > { %v713_v1 = vpop.f32.mrf.mxu2 }
 0x162   : > { %v763_v21 = vadd.f32 %v762_v52, %v713_v1  ;;  %v827_v57 = vmax.f32 %v825_v20, %v826_v30  ;;  %v802_v53 = vrot.slane %v801_v43, 1  ;;  %v823_v6 = vrot.slane %v822_v60, 1 }
 0x163   : > { %v695_v7 = vpop.f32.mrf.mxu0 }
 0x164   : > { %v745_v27 = vadd.f32 %v744_v37, %v695_v7  ;;  %v786_v31 = vadd.f32 %v1711_v16, %v763_v21  ;;  %v828_v51 = vrot.slane %v827_v57, 2  ;;  %v803_v2 = vmax.f32 %v801_v43, %v802_v53 }
 0x165   : > { %v824_v17 = vmax.f32 %v822_v60, %v823_v6 }
 0x166   : > { %v779_v14 = vadd.f32 %v1708_v58, %v745_v27  ;;  %v829_v63 = vmax.f32 %v827_v57, %v828_v51  ;;  %v851_v12 = vadd.f32 %v1182_v8, %v803_v2 }
 0x167   : > { %v854_v28 = vadd.f32 %v1182_v8, %v824_v17 }
 0x168   : > { %v804_v22 = vmax.f32 %v778_v13, %v779_v14  ;;  %v830_v27 = vrot.slane %v829_v63, 1  ;;  %v796_v14 = vmax.f32 %v794_v59, %v795_v5  ;;  %v859_v9 = vmax.f32 %v851_v12, 0.0 }
 0x169   : > { %v715_v24 = vpop.f32.mrf.mxu2  ;;  %v862_v54 = vmax.f32 %v854_v28, 0.0 }
 0x16a   : > { %v805_v25 = vrot.slane %v804_v22, 4  ;;  %v765_v26 = vadd.f32 %v764_v34, %v715_v24  ;;  %v831_v21 = vmax.f32 %v829_v63, %v830_v27  ;;  %v850_v19 = vadd.f32 %v1182_v8, %v796_v14 }
 0x16b   : > { %v698_v29 = vpop.f32.mrf.mxu0  ;;  %v883_v45 = vrot.slane %v862_v54, 4 }
 0x16c   : > { %v806_v32 = vmax.f32 %v804_v22, %v805_v25  ;;  %v787_v33 = vadd.f32 %v1708_v58, %v765_v26  ;;  %v748_v44 = vadd.f32 %v1704_v38, %v698_v29  ;;  %v855_v30 = vadd.f32 %v1182_v8, %v831_v21 }
 0x16e   : > { %v832_v36 = vmax.f32 %v786_v31, %v787_v33  ;;  %v807_v37 = vrot.slane %v806_v32, 2  ;;  %v780_v55 = vadd.f32 %v1711_v16, %v748_v44 }
 0x170   : > { %v833_v39 = vrot.slane %v832_v36, 4  ;;  %v808_v48 = vmax.f32 %v806_v32, %v807_v37  ;;  %v874_v32 = vrot.slane %v859_v9, 7 }
 0x171   : > { %v718_v40 = vpop.f32.mrf.mxu2 }
 0x172   : > { %v834_v49 = vmax.f32 %v832_v36, %v833_v39  ;;  %v809_v61 = vrot.slane %v808_v48, 1  ;;  %v768_v0 = vadd.f32 %v767_v23, %v718_v40  ;;  %v858_v36 = vmax.f32 %v850_v19, 0.0 }
 0x173   : > { %v700_v50 = vpop.f32.mrf.mxu0  ;;  %v863_v23 = vmax.f32 %v855_v30, 0.0 }
 0x174   : > { %v750_v52 = vadd.f32 %v1706_v41, %v700_v50  ;;  %v835_v62 = vrot.slane %v834_v49, 2  ;;  %v810_v41 = vmax.f32 %v808_v48, %v809_v61  ;;  %v788_v10 = vadd.f32 %v1711_v16, %v768_v0 }
 0x175   : > { %v876_v40 = vsel %vm875_vm8, %v874_v32, %v858_v36 }
 0x176   : > { %v781_v56 = vadd.f32 %v1708_v58, %v750_v52  ;;  %v836_v7 = vmax.f32 %v834_v49, %v835_v62  ;;  %v852_v18 = vadd.f32 %v1182_v8, %v810_v41  ;;  %v886_v49 = vrot.slane %v863_v23, 3 }
 0x178   : > { %v811_v38 = vmax.f32 %v780_v55, %v781_v56  ;;  %v837_v20 = vrot.slane %v836_v7, 1  ;;  %v860_v29 = vmax.f32 %v852_v18, 0.0 }
 0x179   : > { %v720_v1 = vpop.f32.mrf.mxu2 }
 0x17a   : > { %v812_v3 = vrot.slane %v811_v38, 4  ;;  %v770_v4 = vadd.f32 %v769_v15, %v720_v1  ;;  %v838_v16 = vmax.f32 %v836_v7, %v837_v20  ;;  %v877_v42 = vrot.slane %v860_v29, 6 }
 0x17c   : > { %v813_v11 = vmax.f32 %v811_v38, %v812_v3  ;;  %v789_v34 = vadd.f32 %v1708_v58, %v770_v4  ;;  %v856_v37 = vadd.f32 %v1182_v8, %v838_v16  ;;  %v879_v46 = vsel %vm878_vm9, %v877_v42, %v876_v40 }
 0x17e   : > { %v814_v47 = vrot.slane %v813_v11, 2  ;;  %v839_v13 = vmax.f32 %v788_v10, %v789_v34  ;;  %v864_v48 = vmax.f32 %v856_v37, 0.0 }
 0x180   : > { %v815_v22 = vmax.f32 %v813_v11, %v814_v47  ;;  %v840_v24 = vrot.slane %v839_v13, 4  ;;  %v889_v56 = vrot.slane %v864_v48, 2 }
 0x182   : > { %v816_v25 = vrot.slane %v815_v22, 1  ;;  %v841_v26 = vmax.f32 %v839_v13, %v840_v24 }
 0x184   : > { %v817_v58 = vmax.f32 %v815_v22, %v816_v25  ;;  %v842_v31 = vrot.slane %v841_v26, 2 }
 0x186   : > { %v853_v33 = vadd.f32 %v1182_v8, %v817_v58  ;;  %v843_v35 = vmax.f32 %v841_v26, %v842_v31 }
 0x188   : > { %v861_v57 = vmax.f32 %v853_v33, 0.0  ;;  %v844_v39 = vrot.slane %v843_v35, 1 }
 0x18a   : > { %v880_v43 = vrot.slane %v861_v57, 5  ;;  %v845_v44 = vmax.f32 %v843_v35, %v844_v39 }
 0x18c   : > { %v857_v50 = vadd.f32 %v1182_v8, %v845_v44  ;;  %v882_v51 = vsel %vm881_vm10, %v880_v43, %v879_v46 }
 0x18d   : > { %v885_v52 = vsel %vm884_vm11, %v883_v45, %v882_v51 }
 0x18e   : > { %v865_v53 = vmax.f32 %v857_v50, 0.0  ;;  %v888_v55 = vsel %vm887_vm12, %v886_v49, %v885_v52 }
 0x18f   : > { %v891_v60 = vsel %vm890_vm13, %v889_v56, %v888_v55 }
 0x190   : > { %v892_v59 = vrot.slane %v865_v53, 1 }
 0x192   : > { %v894_v61 = vsel %vm893_vm14, %v892_v59, %v891_v60 }
 0x193   : > { %896 = vst [vmem:[%s250_s19] sm:$0xff] %v894_v61 }
 0x194   : > { %1300 = shalt.err (!%p1297_p10)
}
 0x195   : > { %1117 = dma.vmem_to_hbm [thread:$0]  (%p1452_p5), %s911_s28, 128, %s913_s29, %s898_s30  }
 0x196 PF: > { %s924_s24 = sand.u32 1, %s1331_s15   ;;  %p1777_p12 = scmp.ge.s32.totalorder %s1343_s18, 2 }
 0x197   : > { %s925_s8 = scalar_lea.sflag [#allocation4], %s924_s24 }
 0x198   : > { %p1131_p13 = pnand %p1777_p12, %p1415_p6 }
 0x19a   : > { %p1132_p0 = pneg %p1131_p13 }
 0x19c   : > { %1326 = dma.done.wait (%p1132_p0), %s925_s8, 128  }
 0x19d   : > { %1328 = vsyncadd (%p1132_p0), %s925_s8, 4294967168  ;;  %p18_p3 = scmp.ge.s32.totalorder %s1439_s12, 4   ;;  %s1778_s15 = smov %s1335_s16 }
 0x19e   : > { %s1779_s16 = smov %s1339_s17  ;;  %s1780_s17 = smov %s1448_s20 }
 0x19f   : > { %s1781_s18 = smov %s1439_s12  ;;  %20 = sbr.rel (!%p18_p3) target bundleno = 6 (0x6), region = 89 }
 0x1a4   :  { %931 = vsyncpa [#allocation3], 1 }
 0x1a5   :  { %933 = vsyncpa [#allocation3 + $0x1], 1 }
 0x1a6   :  { %934 = vsyncpa [#allocation6], 1 }
 0x1a7   :  { %935 = vsyncpa [#allocation4], 1 }
 0x1a8   :  { %937 = vsyncpa [#allocation4 + $0x1], 1 }

</bundles_post_ra>
